<compile_context>
chip_gen: v7x
topology: tpu7x:2x2x1
jax: 0.10.0
libtpu: 0.0.40
codegen_flags: <defaults>
</compile_context>

<pallas_src>
import functools

import jax
import jax.numpy as jnp
from jax import lax
from jax.experimental import pallas as pl
from jax.experimental.pallas import tpu as pltpu


_LANE = 128  # TPU lane width; row tiles and the bank's row count align to it.


# ----------------------------------------------------------------------------
# Generation-aware VMEM budgets
# ----------------------------------------------------------------------------
def _vmem_budgets():
    """Returns (vmem_limit_bytes, tile_budget_bytes) tuned per TPU generation."""
    try:
        cap = int(pltpu.get_tpu_info().vmem_capacity_bytes)
    except Exception:
        cap = 0
    if cap <= 0:
        # Unknown hardware: conservative numbers that work on every generation.
        return 32 * 1024 * 1024, 24 * 1024 * 1024
    if cap >= 96 * 1024 * 1024:
        # v5e / v6e: 128 MiB physical VMEM -> bigger tiles track the roofline.
        return 64 * 1024 * 1024, 48 * 1024 * 1024
    # v7x: 64 MiB per TensorCore -> keep headroom so pipelining isn't squeezed.
    return 48 * 1024 * 1024, 36 * 1024 * 1024


# ----------------------------------------------------------------------------
# Kernels
# ----------------------------------------------------------------------------
def _memory_bank_kernel(x_ref, mem_ref, out_ref, *, inv_temp, scale_x):
    # x_ref:   (B, D)   resident every grid step
    # mem_ref: (TN, D)  streamed tile of memory rows
    # out_ref: (B, TN)  lane-dense output tile
    x = x_ref[...]
    if scale_x:
        # Fold 1/T onto x (B*D elems) instead of the (B, TN) accumulator.
        x = x * inv_temp
    acc = lax.dot_general(
        x, mem_ref[...],
        dimension_numbers=(((1,), (1,)), ((), ())),   # contract last dims: x @ mem.T
        preferred_element_type=jnp.float32,
    )
    if not scale_x:
        acc = acc * inv_temp
    out_ref[...] = acc.astype(out_ref.dtype)


def _memory_bank_kernel_quant(x_ref, mem_ref, scale_ref, out_ref, *, inv_temp):
    # Quantized storage: mem holds raw int8 / fp8 codes, scale_ref holds the
    # per-row f32 scale.  Dequant is applied to the OUTPUT columns after the
    # dot (B*TN muls) instead of the (TN, D) tile.
    x = x_ref[...]
    mem = mem_ref[...].astype(x.dtype)
    acc = lax.dot_general(
        x, mem,
        dimension_numbers=(((1,), (1,)), ((), ())),
        preferred_element_type=jnp.float32,
    )
    out_ref[...] = (acc * (scale_ref[...] * inv_temp)).astype(out_ref.dtype)


# ----------------------------------------------------------------------------
# Tile selection
# ----------------------------------------------------------------------------
def _select_tile_n(B, D, n_phys, *, x_itemsize, mem_itemsize, out_itemsize,
                   scale_itemsize, extra_row_bytes, budget_bytes, buffers,
                   min_steps=8):
    """Largest 128-aligned divisor of n_phys whose buffered footprint fits VMEM.

    Also caps the tile so large banks give the v7x megacore (>=) `min_steps`
    grid steps, preferring an even step count for its 2 TensorCores.
    """
    fixed = 2 * B * D * x_itemsize                    # resident x (double-buffered)
    per_row = (buffers * (D * mem_itemsize + scale_itemsize)
               + 2 * B * out_itemsize + extra_row_bytes)
    avail = budget_bytes - fixed
    if avail < _LANE * per_row:
        # TODO(synk): add a D-blocking ("arbitrary") grid axis with an f32 VMEM
        # accumulator for very large memory_dim instead of failing here.
        raise ValueError(
            "memory_dim too large for a 128-row memory tile within the VMEM "
            "budget; reduce memory_dim or add D-blocking.")
    cap = min((avail // per_row // _LANE) * _LANE, n_phys)
    if n_phys >= min_steps * 1024:
        # Keep tiles >= ~1024 rows (multi-hundred-KB DMAs) but give the grid
        # at least `min_steps` steps so both v7x cores stay busy.
        cap = min(cap, max(1024, (n_phys // min_steps // _LANE) * _LANE))

    largest = None
    for tn in range(cap, _LANE - 1, -_LANE):
        if largest is not None and tn * 2 < largest:
            break                                      # don't halve the tile just for parity
        if n_phys % tn:
            continue
        if largest is None:
            largest = tn
        steps = n_phys // tn
        if steps == 1 or steps % 2 == 0:
            return tn
    return largest if largest is not None else _LANE


def _memory_block_spec(tile_n, D, buffers):
    """Memory-tile BlockSpec; request deeper pipelining when asked, with a
    safe fallback to default double-buffering."""
    index_map = lambda j: (j, 0)
    if buffers != 2:
        try:
            return pl.BlockSpec((tile_n, D), index_map,
                                pipeline_mode=pl.Buffered(buffers))
        except (TypeError, AttributeError):
            pass
    return pl.BlockSpec((tile_n, D), index_map)


# ----------------------------------------------------------------------------
# Forward
# ----------------------------------------------------------------------------
def memory_bank_forward(x, memory, temperature=0.07, *, scales=None, tile_n=None):
    """out = x @ memory.T / temperature  via a Pallas TPU kernel.

    If `scales` is given, `memory` holds quantized codes (int8 / fp8) and
    `scales` is the (1, memory_num) per-row f32 scale sidecar.
    """
    B, D = x.shape
    n_rows, D2 = memory.shape
    assert D == D2, "x and memory feature dims must match"
    quantized = scales is not None

    # Fast path expects the row count already padded to a multiple of 128
    # (MemoryBankJax does this ONCE at construction).  Pad here only as a
    # fallback for direct calls with a ragged bank.
    pad = (-n_rows) % _LANE
    if pad:
        memory = jnp.pad(memory, ((0, pad), (0, 0)))
        if quantized:
            scales = jnp.pad(scales, ((0, 0), (0, pad)), constant_values=1.0)
    n_phys = n_rows + pad

    if not quantized and x.dtype != memory.dtype:
        # bf16 bank -> bf16 MXU inputs, f32 accumulation (documented deviation).
        x = x.astype(memory.dtype)

    out_dtype = jnp.float32
    vmem_limit, tile_budget = _vmem_budgets()
    # Deeper buffering only pays off on big banks with many grid steps.
    buffers = 3 if n_phys >= 8 * 1024 else 2

    if tile_n is None:
        tile_n = _select_tile_n(
            B, D, n_phys,
            x_itemsize=jnp.dtype(x.dtype).itemsize,
            mem_itemsize=jnp.dtype(memory.dtype).itemsize,
            out_itemsize=jnp.dtype(out_dtype).itemsize,
            scale_itemsize=4 if quantized else 0,
            # dequant cast materializes one compute-dtype copy of the tile
            extra_row_bytes=(D * jnp.dtype(x.dtype).itemsize) if quantized else 0,
            budget_bytes=tile_budget,
            buffers=buffers,
        )
    grid = (n_phys // tile_n,)
    inv_temp = float(1.0 / temperature)

    in_specs = [
        pl.BlockSpec((B, D), lambda j: (0, 0)),        # x: resident every step
        _memory_block_spec(tile_n, D, buffers),        # memory: streamed tiles
    ]
    args = [x, memory]
    if quantized:
        in_specs.append(pl.BlockSpec((1, tile_n), lambda j: (0, j)))
        args.append(scales)
        kernel = functools.partial(_memory_bank_kernel_quant, inv_temp=inv_temp)
    else:
        kernel = functools.partial(
            _memory_bank_kernel, inv_temp=inv_temp,
            scale_x=(jnp.dtype(x.dtype) == jnp.dtype(jnp.float32)))

    bytes_accessed = (x.size * jnp.dtype(x.dtype).itemsize
                      + memory.size * jnp.dtype(memory.dtype).itemsize
                      + (scales.size * 4 if quantized else 0)
                      + B * n_phys * jnp.dtype(out_dtype).itemsize)
    cost = pl.CostEstimate(flops=2 * B * D * n_phys, transcendentals=0,
                           bytes_accessed=int(bytes_accessed))

    out = pl.pallas_call(
        kernel,
        out_shape=jax.ShapeDtypeStruct((B, n_phys), out_dtype),
        grid_spec=pltpu.PrefetchScalarGridSpec(
            num_scalar_prefetch=0,
            grid=grid,
            in_specs=in_specs,
            out_specs=pl.BlockSpec((B, tile_n), lambda j: (0, j)),
        ),
        compiler_params=pltpu.CompilerParams(
            # Independent output tiles -> v7x's 2 TensorCores split the axis.
            dimension_semantics=("parallel",),
            vmem_limit_bytes=vmem_limit,
        ),
        cost_estimate=cost,
    )(*args)

    return out if pad == 0 else out[:, :n_rows]


# ----------------------------------------------------------------------------
# Quantized storage helper (int8 for v5e/v6e, float8_e4m3fn for v7x)
# ----------------------------------------------------------------------------
def quantize_memory(memory, qdtype=jnp.int8):
    """Per-row symmetric quantization; returns (codes, scales[1, N])."""
    memory = memory.astype(jnp.float32)
    amax = jnp.max(jnp.abs(memory), axis=-1, keepdims=True)          # (N, 1)
    qdtype = jnp.dtype(qdtype)
    if qdtype == jnp.dtype(jnp.int8):
        qmax = 127.0
        scale = jnp.where(amax > 0, amax / qmax, 1.0)
        codes = jnp.clip(jnp.round(memory / scale), -qmax, qmax).astype(jnp.int8)
    else:  # e.g. jnp.float8_e4m3fn on v7x (its MXU has fp8 but no int paths)
        qmax = float(jnp.finfo(qdtype).max)
        scale = jnp.where(amax > 0, amax / qmax, 1.0)
        codes = (memory / scale).astype(qdtype)
    return codes, scale.reshape(1, -1).astype(jnp.float32)


# ----------------------------------------------------------------------------
# Module-like wrapper
# ----------------------------------------------------------------------------
class MemoryBankJax:
    """Thin wrapper mirroring the PyTorch module's forward."""

    def __init__(self, memory_num, memory_dim, momentum=0.9, temperature=0.07,
                 memory_dtype=jnp.float32, quantize=None, key=None):
        self.momentum = momentum
        # NOTE: deviation — the PyTorch module never sets self.T in __init__.
        self.T = temperature
        self.memory_num = memory_num
        if key is None:
            key = jax.random.PRNGKey(0)
        # PyTorch registers a zeros buffer; we use deterministic L2-normalized
        # randoms (what update_weight maintains) so the numeric check is real.
        mem = jax.random.normal(key, (memory_num, memory_dim), jnp.float32)
        mem = mem / jnp.linalg.norm(mem, axis=-1, keepdims=True)
        # Pad the bank ONCE here (not per forward call) to a 128-row multiple.
        n_pad = (-memory_num) % _LANE
        if n_pad:
            mem = jnp.pad(mem, ((0, n_pad), (0, 0)))
        if quantize is not None:
            self.memory, self.scales = quantize_memory(mem, quantize)
        else:
            self.memory = mem.astype(memory_dtype)
            self.scales = None

    def __call__(self, x, y=None):
        # y is unused, matching the PyTorch forward signature.
        out = memory_bank_forward(x, self.memory, self.T, scales=self.scales)
        if out.shape[1] != self.memory_num:
            out = out[:, : self.memory_num]     # drop construction-pad columns
        return out

    # TODO(synk): update_weight / set_weight / update_temp_weight are stateful
    # buffer mutations outside forward; if fused with the forward they could
    # reuse the single HBM stream of the bank (biggest remaining lever).


if __name__ == "__main__":
    key = jax.random.PRNGKey(0)
    k_mem, k_x = jax.random.split(key)

    batch, memory_dim, memory_num = 8, 128, 256
    x = jax.random.normal(k_x, (batch, memory_dim), jnp.float32)
    y = jnp.zeros((batch,), jnp.int32)  # unused, present for API parity
    inv_t = 1.0 / 0.07

    # --- f32 bank: tight check against plain JAX ----------------------------
    bank = MemoryBankJax(memory_num, memory_dim, key=k_mem)
    out = jax.block_until_ready(bank(x, y))
    ref = (x * inv_t) @ bank.memory[:memory_num].T
    assert out.shape == (batch, memory_num)
    assert jnp.allclose(out, ref, atol=1e-3, rtol=1e-3)

    # --- ragged bank (memory_num not a multiple of 128): construction-time
    #     pad only, no per-call pad, padded columns sliced off ---------------
    bank_rag = MemoryBankJax(200, memory_dim, key=k_mem)
    out_rag = jax.block_until_ready(bank_rag(x, y))
    ref_rag = (x * inv_t) @ bank_rag.memory[:200].T
    assert out_rag.shape == (batch, 200)
    assert jnp.allclose(out_rag, ref_rag, atol=1e-3, rtol=1e-3)

    # --- bf16 bank: halves streamed HBM bytes, f32 accumulation -------------
    bank_bf16 = MemoryBankJax(memory_num, memory_dim,
                              memory_dtype=jnp.bfloat16, key=k_mem)
    out_b = jax.block_until_ready(bank_bf16(x, y))
    ref_b = (x.astype(jnp.bfloat16).astype(jnp.float32)
             @ bank_bf16.memory.astype(jnp.float32).T) * inv_t
    assert out_b.shape == (batch, memory_num)
    assert jnp.allclose(out_b, ref_b, atol=2e-3, rtol=2e-3)

    # --- int8 bank: 4x fewer streamed bytes (use jnp.float8_e4m3fn on v7x) --
    bank_q = MemoryBankJax(memory_num, memory_dim, quantize=jnp.int8, key=k_mem)
    out_q = jax.block_until_ready(bank_q(x, y))
    ref_q = (x @ bank_q.memory.astype(jnp.float32).T) * bank_q.scales * inv_t
    assert out_q.shape == (batch, memory_num)
    assert jnp.allclose(out_q, ref_q, atol=1e-2, rtol=1e-2)

    print("KERNEL_OK")
</pallas_src>

<mosaic_0001>
module attributes {stable_mosaic.version = 11 : i64} {
  func.func @_memory_bank_kernel(%arg0: i32, %arg1: memref<8x128xf32, #tpu.memory_space<vmem>>, %arg2: memref<256x128xf32, #tpu.memory_space<vmem>>, %arg3: memref<8x256xf32, #tpu.memory_space<vmem>>) attributes {dimension_semantics = [#tpu.dimension_semantics<parallel>], iteration_bounds = array<i64: 1>, scalar_prefetch = 0 : i64, scratch_operands = 0 : i64, tpu.core_type = #tpu.core_type<tc>, window_params = [{pipeline_mode = #tpu.pipeline_mode<synchronous>, transform_indices = @transform_0, window_bounds = array<i64: 8, 128>}, {transform_indices = @transform_1, window_bounds = array<i64: 256, 128>}, {transform_indices = @transform_2, window_bounds = array<i64: 8, 256>}]} {
    %c0 = arith.constant 0 : index
    %c0_0 = arith.constant 0 : index
    %0 = vector.load %arg1[%c0, %c0_0] : memref<8x128xf32, #tpu.memory_space<vmem>>, vector<8x128xf32>
    %cst = arith.constant 14.2857141 : f32
    %1 = vector.broadcast %cst : f32 to vector<8x128xf32>
    %2 = arith.mulf %0, %1 : vector<8x128xf32>
    %c0_1 = arith.constant 0 : index
    %c0_2 = arith.constant 0 : index
    %3 = vector.load %arg2[%c0_1, %c0_2] : memref<256x128xf32, #tpu.memory_space<vmem>>, vector<256x128xf32>
    %cst_3 = arith.constant dense<0.000000e+00> : vector<8x256xf32>
    %4 = tpu.matmul %2, %3, %cst_3 {dimension_numbers = #tpu.dot_dimension_numbers<[1], [1], [0], [0], [0, 0, 1, 0], [], []>} : vector<8x128xf32>, vector<256x128xf32>, vector<8x256xf32> -> vector<8x256xf32>
    %c0_4 = arith.constant 0 : index
    %c0_5 = arith.constant 0 : index
    %5 = vector.load %arg3[%c0_4, %c0_5] : memref<8x256xf32, #tpu.memory_space<vmem>>, vector<8x256xf32>
    tpu.vector_store %arg3[%c0_4, %c0_5], %4 {strides = array<i32>} : memref<8x256xf32, #tpu.memory_space<vmem>>, vector<8x256xf32>,
    return
  }
  func.func @transform_0(%arg0: i32) -> (i32, i32) {
    %c0_i32 = arith.constant 0 : i32
    %c0_i32_0 = arith.constant 0 : i32
    %c0_i32_1 = arith.constant 0 : i32
    return %c0_i32, %c0_i32_0 : i32, i32
  }
  func.func @transform_1(%arg0: i32) -> (i32, i32) {
    %c0_i32 = arith.constant 0 : i32
    %c0_i32_0 = arith.constant 0 : i32
    return %arg0, %c0_i32 : i32, i32
  }
  func.func @transform_2(%arg0: i32) -> (i32, i32) {
    %c0_i32 = arith.constant 0 : i32
    %c0_i32_0 = arith.constant 0 : i32
    return %c0_i32, %arg0 : i32, i32
  }
}

</mosaic_0001>

<bundles_post_ra>
// kernel: tpu_custom_call.1
= control target key start
LH: loop header
LB: loop body
LE: loop exit
PB: predicated region body
PF: predicated region fallthrough
CT: control target
= control target key end

     0   :  { %7 = vsyncpa [#allocation3], 0  ;;  %s367_s0 = inlined_call_operand.hbm [shape: f32[8,128], index: 0, kind: input, shape index: {}]   ;;  %s368_s1 = inlined_call_operand.hbm [shape: f32[256,128], index: 1, kind: input, shape index: {}]   ;;  %s369_s2 = inlined_call_operand.hbm [shape: f32[8,256], index: 2, kind: output, shape index: {}]  }
   0x1   :  { %8 = vsyncpa [#allocation6], 0 }
   0x2   :  { %9 = vsyncpa [#allocation4], 0  ;;  %s304_s9 = smov [#allocation2]   ;;  %s305_s11 = smov [#allocation5]  }
   0x3   :  { %s16_s10 = sshll.u32 %s304_s9, 4  ;;  %s25_s12 = sshll.u32 %s305_s11, 4  ;;  %s17_s10 = int_to_ptr.vmem [resolvable:$true] %s16_s10  ;;  %s324_s12 = int_to_ptr.vmem [resolvable:$true] %s25_s12 }
   0x4   :  { %s232_s15 = scalar_lea.hbm %s367_s0, 128 }
   0x5   :  { %p233_p0 = scmp.ne.s32.totalorder %s367_s0, %s232_s15  ;;  %p236_p1 = scmp.lt.u32.totalorder %s232_s15, %s367_s0 }
   0x7   :  { %p238_p2 = pnand %p236_p1, %p233_p0 }
   0x9   :  { %241 = shalt.err (!%p238_p2)
}
   0xa   :  { %s242_s20 = scalar_lea.vmem %s17_s10, 128  ;;  %p247_p4 = scmp.lt.s32.totalorder %s17_s10, %s17_s10 }
   0xb   :  { %p243_p3 = scmp.ne.s32.totalorder %s17_s10, %s242_s20  ;;  %p248_p5 = scmp.lt.s32.totalorder %s242_s20, %s242_s20 }
   0xd   :  { %p249_p6 = por %p248_p5, %p247_p4 }
   0xf   :  { %p250_p7 = pnand %p249_p6, %p243_p3 }
  0x11   :  { %253 = shalt.err (!%p250_p7)
}
  0x12   :  { %19 = dma.hbm_to_vmem [thread:$0]  %s367_s0, 128, %s17_s10, [#allocation3]  }
  0x13   :  { %s254_s25 = scalar_lea.hbm %s368_s1, 4096 }
  0x14   :  { %p255_p8 = scmp.ne.s32.totalorder %s368_s1, %s254_s25  ;;  %p258_p9 = scmp.lt.u32.totalorder %s254_s25, %s368_s1 }
  0x16   :  { %p260_p10 = pnand %p258_p9, %p255_p8 }
  0x18   :  { %263 = shalt.err (!%p260_p10)
}
  0x19   :  { %s264_s30 = scalar_lea.vmem %s324_s12, 4096  ;;  %p269_p12 = scmp.lt.s32.totalorder %s324_s12, %s324_s12 }
  0x1a   :  { %p265_p11 = scmp.ne.s32.totalorder %s324_s12, %s264_s30  ;;  %p270_p13 = scmp.lt.s32.totalorder %s264_s30, %s264_s30 }
  0x1c   :  { %p271_p0 = por %p270_p13, %p269_p12 }
  0x1e   :  { %p272_p1 = pnand %p271_p0, %p265_p11 }
  0x20   :  { %275 = shalt.err (!%p272_p1)
}
  0x21   :  { %s306_s0 = smov 128   ;;  %s307_s3 = smov 8  }
  0x22   :  { %31 = dma.hbm_to_vmem [thread:$0]  %s368_s1, 4096, %s324_s12, [#allocation6], %s306_s0, %s306_s0, %s307_s3  }
  0x23   :  { %298 = dma.done.wait [#allocation3], 128  }
  0x24   :  { %299 = vsyncadd [#allocation3], 4294967168 }
  0x25   :  { %300 = dma.done.wait [#allocation6], 4096  }
  0x26   :  { %301 = vsyncadd [#allocation6], 4294963200  ;;  %v56_v0 = vld [vmem:[#allocation5 + $0x80] sm:$0xff]  ;;  %v57_v1 = vld [vmem:[#allocation5 + $0x88] sm:$0xff]  ;;  %s308_s1 = smov [#allocation7]  }
  0x27   :  { %v40_v2 = vld [vmem:[#allocation5] sm:$0xff]  ;;  %v195_v3 = vpack.c.bf16 %v57_v1, %v56_v0  ;;  %v41_v4 = vld [vmem:[#allocation5 + $0x8] sm:$0xff]  ;;  %v58_v5 = vld [vmem:[#allocation5 + $0x90] sm:$0xff]  ;;  %s151_s6 = sshll.u32 %s308_s1, 4  ;;  %s152_s6 = int_to_ptr.vmem [resolvable:$true] %s151_s6 }
  0x28   :  { %v59_v6 = vld [vmem:[#allocation5 + $0x98] sm:$0xff]  ;;  %v197_v7 = vpack.c.bf16 %v41_v4, %v40_v2  ;;  %v42_v9 = vld [vmem:[#allocation5 + $0x10] sm:$0xff]  ;;  %v60_v11 = vld [vmem:[#allocation5 + $0xa0] sm:$0xff]  ;;  %s276_s7 = scalar_lea.vmem %s152_s6, 256  ;;  %p281_p3 = scmp.lt.s32.totalorder %s152_s6, %s152_s6 }
  0x29   :  { %v199_v8 = vpack.c.bf16 %v59_v6, %v58_v5  ;;  %196 = vmatprep.subr.bf16.mxu0 %v195_v3  ;;  %v43_v10 = vld [vmem:[#allocation5 + $0x18] sm:$0xff]  ;;  %v61_v12 = vld [vmem:[#allocation5 + $0xa8] sm:$0xff]  ;;  %v44_v17 = vld [vmem:[#allocation5 + $0x20] sm:$0xff]  ;;  %p277_p2 = scmp.ne.s32.totalorder %s152_s6, %s276_s7  ;;  %p282_p4 = scmp.lt.s32.totalorder %s276_s7, %s276_s7 }
  0x2a   :  { %198 = vmatpush3.bf16.xpose.msra.mxu0 %v197_v7  ;;  %v201_v13 = vpack.c.bf16 %v43_v10, %v42_v9  ;;  %v203_v14 = vpack.c.bf16 %v61_v12, %v60_v11  ;;  %v38_v15 = vld [vmem:[#allocation2] sm:$0xff]  ;;  %v45_v18 = vld [vmem:[#allocation5 + $0x28] sm:$0xff]  ;;  %v62_v19 = vld [vmem:[#allocation5 + $0xb0] sm:$0xff] }
  0x2b   :  { %200 = vmatprep.subr.bf16.mxu0 %v199_v8  ;;  %v39_v16 = vmul.f32 14.285714, %v38_v15  ;;  %v63_v20 = vld [vmem:[#allocation5 + $0xb8] sm:$0xff]  ;;  %v205_v21 = vpack.c.bf16 %v45_v18, %v44_v17  ;;  %v46_v23 = vld [vmem:[#allocation5 + $0x30] sm:$0xff]  ;;  %v64_v25 = vld [vmem:[#allocation5 + $0xc0] sm:$0xff]  ;;  %p283_p5 = por %p282_p4, %p281_p3 }
  0x2c   :  { %v207_v22 = vpack.c.bf16 %v63_v20, %v62_v19  ;;  %v47_v24 = vld [vmem:[#allocation5 + $0x38] sm:$0xff]  ;;  %v65_v26 = vld [vmem:[#allocation5 + $0xc8] sm:$0xff]  ;;  %v48_v29 = vld [vmem:[#allocation5 + $0x40] sm:$0xff] }
  0x2d   :  { %193 = vmatprep.mubr.f32.mxu0 %v39_v16  ;;  %v209_v27 = vpack.c.bf16 %v47_v24, %v46_v23  ;;  %v211_v28 = vpack.c.bf16 %v65_v26, %v64_v25  ;;  %v49_v30 = vld [vmem:[#allocation5 + $0x48] sm:$0xff]  ;;  %v66_v31 = vld [vmem:[#allocation5 + $0xd0] sm:$0xff]  ;;  %v67_v32 = vld [vmem:[#allocation5 + $0xd8] sm:$0xff]  ;;  %p284_p6 = pnand %p283_p5, %p277_p2 }
  0x2e   :  { %v213_v33 = vpack.c.bf16 %v49_v30, %v48_v29  ;;  %v215_v34 = vpack.c.bf16 %v67_v32, %v66_v31  ;;  %v50_v35 = vld [vmem:[#allocation5 + $0x50] sm:$0xff]  ;;  %v51_v36 = vld [vmem:[#allocation5 + $0x58] sm:$0xff]  ;;  %v68_v37 = vld [vmem:[#allocation5 + $0xe0] sm:$0xff] }
  0x2f   :  { %v69_v38 = vld [vmem:[#allocation5 + $0xe8] sm:$0xff]  ;;  %v217_v39 = vpack.c.bf16 %v51_v36, %v50_v35  ;;  %v52_v41 = vld [vmem:[#allocation5 + $0x60] sm:$0xff]  ;;  %v70_v43 = vld [vmem:[#allocation5 + $0xf0] sm:$0xff] }
  0x30   :  { %v219_v40 = vpack.c.bf16 %v69_v38, %v68_v37  ;;  %v53_v42 = vld [vmem:[#allocation5 + $0x68] sm:$0xff]  ;;  %v71_v44 = vld [vmem:[#allocation5 + $0xf8] sm:$0xff]  ;;  %v54_v47 = vld [vmem:[#allocation5 + $0x70] sm:$0xff] }
  0x31   :  { %v221_v45 = vpack.c.bf16 %v53_v42, %v52_v41  ;;  %v223_v46 = vpack.c.bf16 %v71_v44, %v70_v43  ;;  %v55_v48 = vld [vmem:[#allocation5 + $0x78] sm:$0xff] }
  0x32   :  { %202 = vmatpush3.bf16.xpose.msra.mxu0 %v201_v13  ;;  %v225_v49 = vpack.c.bf16 %v55_v48, %v54_v47 }
  0x33   :  { %204 = vmatprep.subr.bf16.mxu0 %v203_v14 }
  0x3a   :  { %206 = vmatpush3.bf16.xpose.msra.mxu0 %v205_v21 }
  0x3b   :  { %208 = vmatprep.subr.bf16.mxu0 %v207_v22 }
  0x42   :  { %210 = vmatpush3.bf16.xpose.msra.mxu0 %v209_v27 }
  0x43   :  { %212 = vmatprep.subr.bf16.mxu0 %v211_v28 }
  0x4a   :  { %214 = vmatpush3.bf16.xpose.msra.mxu0 %v213_v33 }
  0x4b   :  { %216 = vmatprep.subr.bf16.mxu0 %v215_v34 }
  0x52   :  { %218 = vmatpush3.bf16.xpose.msra.mxu0 %v217_v39 }
  0x53   :  { %220 = vmatprep.subr.bf16.mxu0 %v219_v40 }
  0x5a   :  { %222 = vmatpush3.bf16.xpose.msra.mxu0 %v221_v45 }
  0x5b   :  { %224 = vmatprep.subr.bf16.mxu0 %v223_v46 }
  0x62   :  { %226 = vmatpush3.bf16.xpose.msra.mxu0 %v225_v49 }
  0x69   :  { %194 = vmatmul.mubr.f32.vlgmr.msra.gmra.mrb[0].mxu0 %v39_v16 }
 0x13c   :  { %v138_v50 = vpop.f32.mrb[0].mxu0 }
 0x13d   :  { %143 = vst [vmem:[#allocation7] sm:$0xff] %v138_v50  ;;  %v140_v51 = vpop.f32.mrb[1].mxu0 }
 0x13e   :  { %144 = vst [vmem:[#allocation7 + $0x8] sm:$0xff] %v140_v51 }
 0x13f   :  { %287 = shalt.err (!%p284_p6)
}
 0x140   :  { %s288_s10 = scalar_lea.hbm %s369_s2, 256 }
 0x141   :  { %p289_p7 = scmp.ne.s32.totalorder %s369_s2, %s288_s10  ;;  %p292_p8 = scmp.lt.u32.totalorder %s288_s10, %s369_s2 }
 0x143   :  { %p294_p9 = pnand %p292_p8, %p289_p7 }
 0x145   :  { %297 = shalt.err (!%p294_p9)
}
 0x146   :  { %154 = dma.vmem_to_hbm [thread:$0]  %s152_s6, 256, %s369_s2, [#allocation4]  }
 0x147   :  { %302 = dma.done.wait [#allocation4], 256  }
 0x148   :  { %303 = vsyncadd [#allocation4], 4294967040 }
 0x149   :  { %158 = vsyncpa [#allocation3], 1 }
 0x14a   :  { %159 = vsyncpa [#allocation6], 1 }
 0x14b   :  { %160 = vsyncpa [#allocation4], 1 }

</bundles_post_ra>
